<compile_context>
chip_gen: v5e
topology: v5e:2x2
jax: 0.10.0
libtpu: 0.0.40
codegen_flags: <defaults>
</compile_context>

<pallas_src>
import jax
import jax.numpy as jnp
from jax.experimental import pallas as pl
from jax.experimental.pallas import tpu as pltpu


def _tpu_generation():
    """Best-effort TPU generation detection (7 = v7x, 6 = v6e, 5 = v5e, ...)."""
    try:
        kind = jax.devices()[0].device_kind.lower()
    except Exception:
        return 6
    for gen in (7, 6, 5, 4):
        if f"v{gen}" in kind or f"tpu{gen}" in kind:
            return gen
    return 6


def _make_scale_kernel(compute_dtype):
    def kernel(params_ref, x_ref, o_ref):
        # params_ref: (2,) f32 in SMEM, resident for the whole call.
        w = params_ref[0].astype(compute_dtype)
        b = params_ref[1].astype(compute_dtype)
        o_ref[...] = (x_ref[...].astype(compute_dtype) * w + b).astype(o_ref.dtype)
    return kernel


def _scale_2d(x2d, params, out_dtype, compute_dtype):
    rows, lanes = x2d.shape
    itemsize = x2d.dtype.itemsize
    gen = _tpu_generation()

    # Generation-aware tile sizing (bytes per pipelined buffer).
    if gen >= 7:
        tile_bytes, vmem_limit = 4 << 20, 32 << 20      # 2 TCs, ~3.2 TB/s HBM
    elif gen == 6:
        tile_bytes, vmem_limit = 2 << 20, 32 << 20
    else:                                               # v5e & unknown: stay under 16 MiB scoped default
        tile_bytes, vmem_limit = 2 << 20, None

    tile_rows_target = max(8, (tile_bytes // (lanes * itemsize)) // 8 * 8)

    if rows <= tile_rows_target:
        if gen >= 7 and rows >= 16:
            # Split into >= 2 grid steps so the "parallel" axis shards across
            # both v7x TensorCores.
            tile_rows = ((pl.cdiv(rows, 2) + 7) // 8) * 8
        else:
            tile_rows = rows          # single block == full array dims (always legal)
    else:
        tile_rows = tile_rows_target  # multiple of 8; Pallas masks the ragged tail block

    grid = (pl.cdiv(rows, tile_rows),)

    cp_kwargs = dict(dimension_semantics=("parallel",))
    if vmem_limit is not None:
        cp_kwargs["vmem_limit_bytes"] = vmem_limit

    return pl.pallas_call(
        _make_scale_kernel(compute_dtype),
        out_shape=jax.ShapeDtypeStruct((rows, lanes), out_dtype),
        grid=grid,
        in_specs=[
            pl.BlockSpec(memory_space=pltpu.SMEM),               # packed (w, b), loaded once
            pl.BlockSpec((tile_rows, lanes), lambda i: (i, 0)),  # lane-dense input slab
        ],
        out_specs=pl.BlockSpec((tile_rows, lanes), lambda i: (i, 0)),
        compiler_params=pltpu.CompilerParams(**cp_kwargs),
        cost_estimate=pl.CostEstimate(
            flops=2 * rows * lanes,
            transcendentals=0,
            bytes_accessed=rows * lanes * (itemsize + jnp.dtype(out_dtype).itemsize),
        ),
    )(params, x2d)


def scale_layer(x, w, b):
    """y = w * x + b, matching ScaleLayer.forward semantics (scalar broadcast)."""
    orig_shape = x.shape
    out_dtype = x.dtype
    total = x.size
    if total == 0:
        return x

    # Pack both scalars into one SMEM-resident f32 array (one operand, no per-step DMAs).
    params = jnp.concatenate(
        [jnp.asarray(w, jnp.float32).reshape(-1)[:1],
         jnp.asarray(b, jnp.float32).reshape(-1)[:1]])

    # bf16 FMA on v6e/v7x (bf16 VALU); f32 compute elsewhere.
    if out_dtype == jnp.bfloat16 and _tpu_generation() >= 6:
        compute_dtype = jnp.bfloat16
    else:
        compute_dtype = jnp.float32

    # Lane-dense 2-D factorization with no padding whenever possible.
    lanes = next((c for c in (512, 256, 128) if total % c == 0), None)
    if lanes is not None:
        rows = total // lanes
        out2d = _scale_2d(x.reshape(rows, lanes), params, out_dtype, compute_dtype)
        return out2d.reshape(orig_shape)

    # Rare fallback (total not a multiple of 128): pad flat up to one lane width.
    # TODO(synk): mask the sub-128 tail in-kernel instead of padding; such sizes are tiny/rare.
    lanes = 128
    rows = pl.cdiv(total, lanes)
    flat = jnp.pad(x.reshape(-1), (0, rows * lanes - total))
    out2d = _scale_2d(flat.reshape(rows, lanes), params, out_dtype, compute_dtype)
    return out2d.reshape(-1)[:total].reshape(orig_shape)


if __name__ == "__main__":
    # Deterministic parameter init, same as nn.Module __init__: w = ones(1), b = zeros(1), float32.
    w = jnp.ones((1,), dtype=jnp.float32)
    b = jnp.zeros((1,), dtype=jnp.float32)

    key = jax.random.PRNGKey(0)
    x = jax.random.normal(key, (2, 4, 16, 16), dtype=jnp.float32)  # NCHW

    scale_fn = jax.jit(scale_layer)

    # Module-default parameters.
    y = jax.block_until_ready(scale_fn(x, w, b))
    assert y.shape == x.shape and y.dtype == x.dtype
    assert jnp.allclose(y, w[0] * x + b[0], atol=1e-6, rtol=1e-6)

    # Non-trivial parameters.
    w2 = jnp.full((1,), 1.7, dtype=jnp.float32)
    b2 = jnp.full((1,), -0.3, dtype=jnp.float32)
    y2 = jax.block_until_ready(scale_fn(x, w2, b2))
    assert jnp.allclose(y2, w2[0] * x + b2[0], atol=1e-5, rtol=1e-5)

    # Larger shape (multi-step grid path / two-TC split on v7x).
    x_big = jax.random.normal(jax.random.PRNGKey(1), (16, 8, 32, 32), dtype=jnp.float32)
    y_big = jax.block_until_ready(scale_fn(x_big, w2, b2))
    assert jnp.allclose(y_big, w2[0] * x_big + b2[0], atol=1e-5, rtol=1e-5)

    # Odd element count (exercises the rare padded fallback path).
    x_odd = jax.random.normal(jax.random.PRNGKey(2), (3, 5, 7), dtype=jnp.float32)
    y_odd = jax.block_until_ready(scale_fn(x_odd, w2, b2))
    assert jnp.allclose(y_odd, w2[0] * x_odd + b2[0], atol=1e-5, rtol=1e-5)

    # bf16 activations: bf16-wide store (bf16 compute on v6e/v7x, f32 on v5e).
    x_bf16 = x.astype(jnp.bfloat16)
    y_bf16 = jax.block_until_ready(scale_fn(x_bf16, w2, b2))
    ref_bf16 = (w2[0] * x_bf16.astype(jnp.float32) + b2[0]).astype(jnp.bfloat16)
    assert y_bf16.dtype == jnp.bfloat16
    assert jnp.allclose(y_bf16.astype(jnp.float32), ref_bf16.astype(jnp.float32),
                        atol=3e-2, rtol=3e-2)

    print("KERNEL_OK")
</pallas_src>

<mosaic_0001>
module attributes {stable_mosaic.version = 11 : i64} {
  func.func @kernel(%arg0: i32, %arg1: memref<2xf32, #tpu.memory_space<smem>>, %arg2: memref<4x512xf32, #tpu.memory_space<vmem>>, %arg3: memref<4x512xf32, #tpu.memory_space<vmem>>) attributes {dimension_semantics = [#tpu.dimension_semantics<parallel>], iteration_bounds = array<i64: 1>, scalar_prefetch = 0 : i64, scratch_operands = 0 : i64, tpu.core_type = #tpu.core_type<tc>, window_params = [{transform_indices = @transform_0, window_bounds = array<i64: 2>}, {transform_indices = @transform_1, window_bounds = array<i64: 4, 512>}, {transform_indices = @transform_2, window_bounds = array<i64: 4, 512>}]} {
    %c0 = arith.constant 0 : index
    %0 = memref.load %arg1[%c0] : memref<2xf32, #tpu.memory_space<smem>>
    %c1 = arith.constant 1 : index
    %1 = memref.load %arg1[%c1] : memref<2xf32, #tpu.memory_space<smem>>
    %c0_0 = arith.constant 0 : index
    %c0_1 = arith.constant 0 : index
    %2 = vector.load %arg2[%c0_0, %c0_1] : memref<4x512xf32, #tpu.memory_space<vmem>>, vector<4x512xf32>
    %3 = vector.broadcast %0 : f32 to vector<4x512xf32>
    %4 = arith.mulf %2, %3 : vector<4x512xf32>
    %5 = vector.broadcast %1 : f32 to vector<4x512xf32>
    %6 = arith.addf %4, %5 : vector<4x512xf32>
    %c0_2 = arith.constant 0 : index
    %c0_3 = arith.constant 0 : index
    %7 = vector.load %arg3[%c0_2, %c0_3] : memref<4x512xf32, #tpu.memory_space<vmem>>, vector<4x512xf32>
    tpu.vector_store %arg3[%c0_2, %c0_3], %6 {strides = array<i32>} : memref<4x512xf32, #tpu.memory_space<vmem>>, vector<4x512xf32>,
    return
  }
  func.func @transform_0(%arg0: i32) -> i32 {
    %c0_i32 = arith.constant 0 : i32
    %c0_i32_0 = arith.constant 0 : i32
    return %c0_i32 : i32
  }
  func.func @transform_1(%arg0: i32) -> (i32, i32) {
    %c0_i32 = arith.constant 0 : i32
    %c0_i32_0 = arith.constant 0 : i32
    return %arg0, %c0_i32 : i32, i32
  }
  func.func @transform_2(%arg0: i32) -> (i32, i32) {
    %c0_i32 = arith.constant 0 : i32
    %c0_i32_0 = arith.constant 0 : i32
    return %arg0, %c0_i32 : i32, i32
  }
}

</mosaic_0001>

<bundles_post_ra>
// kernel: scale_layer.1
= control target key start
LH: loop header
LB: loop body
LE: loop exit
PB: predicated region body
PF: predicated region fallthrough
CT: control target
= control target key end

     0   :  { %7 = vsyncpa [#allocation3], 0  ;;  %s57_s12 = smov [#allocation2]   ;;  %s88_s0 = inlined_call_operand.vmem [shape: f32[2], index: 0, kind: input, shape index: {}]   ;;  %s89_s1 = inlined_call_operand.vmem [shape: f32[4,512], index: 1, kind: input, shape index: {}]   ;;  %s90_s2 = inlined_call_operand.vmem [shape: f32[4,512], index: 2, kind: output, shape index: {}]  }
   0x1   :  { %s13_s11 = sshll.u32 %s88_s0, 4  ;;  %s14_s11 = int_to_ptr.vmem [resolvable:$true] %s13_s11 }
   0x2   :  { %16 = dma.vmem_to_smem %s14_s11, 16, %s57_s12, [#allocation3]  }
   0x3   :  { %55 = dma.done.wait [#allocation3], 16  }
   0x4   :  { %56 = vsyncadd [#allocation3], 4294967280 }
   0x5   :  { %23 = sfence }
   0x6   :  { %s24_s13 = sld [smem:[#allocation2]]  ;;  %v26_v0 = vld [vmem:[%s89_s1] sm:$0xff]  ;;  %v27_v1 = vld [vmem:[%s89_s1 + $0x8] sm:$0xff] }
   0x7   :  { %s41_s14 = sld [smem:[#allocation2 + $0x1]] }
   0xc   :  { %v28_v2 = vstv %s24_s13 }
   0xd   :  { %v29_v3 = vmul.f32 %v28_v2, %v26_v0  ;;  %v31_v4 = vstv %s41_s14  ;;  %v30_v5 = vmul.f32 %v28_v2, %v27_v1 }
   0xf   :  { %v32_v6 = vadd.f32 %v31_v4, %v29_v3  ;;  %v33_v7 = vadd.f32 %v31_v4, %v30_v5 }
  0x11   :  { %34 = vst [vmem:[%s90_s2] sm:$0xff] %v32_v6 }
  0x12   :  { %35 = vst [vmem:[%s90_s2 + $0x8] sm:$0xff] %v33_v7 }
  0x13   :  { %40 = vsyncpa [#allocation3], 1 }

</bundles_post_ra>
